<compile_context>
chip_gen: v7x
topology: tpu7x:2x2x1
jax: 0.10.0
libtpu: 0.0.40
codegen_flags: <defaults>
</compile_context>

<pallas_src>
import functools
import math

import jax
import jax.numpy as jnp
from jax import lax
from jax.experimental import pallas as pl
from jax.experimental.pallas import tpu as pltpu


def _kernel(n_head, H, V, x_ref, wa_ref, wb_ref, aff_ref, bias_ref, avg_ref,
            o_ref):
    f32, bf16 = jnp.float32, jnp.bfloat16
    x = x_ref[...]                                   # (T, E) f32, one sequence
    T, E = x.shape
    hd = E // n_head
    avg = avg_ref[...]                               # (E, E) block-diag 1/hd

    def channel_norm(h, gamma, beta, eps=1e-5):
        # One f32 MXU pass for both statistics: rows [h ; h*h] -> [mu ; E[x^2]].
        stacked = jnp.concatenate([h, h * h], axis=0)            # (2T, E)
        stats = jnp.dot(stacked, avg, preferred_element_type=f32)
        mu, ex2 = stats[:T], stats[T:]
        var = jnp.maximum(ex2 - mu * mu, 0.0)
        return (h - mu) * lax.rsqrt(var + eps) * gamma + beta

    def softmax(s):
        m = jnp.max(s, axis=-1, keepdims=True)
        e = jnp.exp(s - m)
        return e / jnp.sum(e, axis=-1, keepdims=True)            # exact divide

    g1, b1 = aff_ref[0:1, :], aff_ref[1:2, :]
    g2, b2 = aff_ref[2:3, :], aff_ref[3:4, :]

    # ---------------- ln_1 (ChannelNorm) + SymbolicAttention -----------------
    xn = channel_norm(x, g1, b1)
    w_qkv = wa_ref[:, 0:3 * E]                       # (E, 3E) bf16, q-scaled
    qkv = jnp.dot(xn.astype(bf16), w_qkv, preferred_element_type=f32)
    qkv = qkv + bias_ref[0:1, 0:3 * E]               # (T, 3E) f32

    def split_heads(base):                           # lane slices -> (h, T, hd)
        return jnp.stack(
            [qkv[:, base + h * hd: base + (h + 1) * hd] for h in range(n_head)],
            axis=0)

    qh = split_heads(0)
    kh = split_heads(E)
    vh = split_heads(2 * E)

    s = jnp.einsum('hqd,hkd->hqk', qh.astype(bf16), kh.astype(bf16),
                   preferred_element_type=f32)       # (h, T, T) f32
    ri = lax.broadcasted_iota(jnp.int32, (T, T), 0)
    ci = lax.broadcasted_iota(jnp.int32, (T, T), 1)
    s = jnp.where((ri >= ci)[None, :, :], s, -1e30)  # in-kernel causal mask
    p = softmax(s)
    ctx = jnp.einsum('hqk,hkd->hqd', p.astype(bf16), vh.astype(bf16),
                     preferred_element_type=f32)     # (h, T, hd)
    # Re-concatenate heads on the lane axis -> one fused (E,E) out-projection.
    ctx2 = jnp.concatenate([ctx[h] for h in range(n_head)], axis=1)  # (T, E)
    w_o = wa_ref[:, 3 * E:4 * E]
    attn = jnp.dot(ctx2.astype(bf16), w_o, preferred_element_type=f32)
    attn = attn + bias_ref[1:2, 0:E]
    x = x + attn                                     # residual 1 (f32)

    # ---------------- ln_2 (ChannelNorm) + VocabFFN --------------------------
    xn2 = channel_norm(x, g2, b2)
    w_fc = wa_ref[:, 4 * E:4 * E + H]
    h = jnp.dot(xn2.astype(bf16), w_fc, preferred_element_type=f32)
    h = h + bias_ref[2:3, 0:H]
    # TODO(synk): PyTorch nn.GELU defaults to exact erf; tanh approximation used.
    h = jax.nn.gelu(h, approximate=True)
    w_pr = wb_ref[0:H, :]                            # (H, E), 1/sqrt(E) folded
    z = jnp.dot(h.astype(bf16), w_pr, preferred_element_type=f32)
    z = z + bias_ref[3:4, 0:E]

    emb_t = wa_ref[:, 4 * E + H:4 * E + H + V]       # (E, V) bf16 (pre-transposed)
    # TODO(synk): at realistic vocab sizes, stream emb in (tv, E) tiles on a
    # pipelined grid axis with an online softmax (required before scaling on
    # v7x's 64 MiB VMEM; also pipelines w_fc/w_pr on v5e's slower HBM).
    logits = jnp.dot(z.astype(bf16), emb_t, preferred_element_type=f32)  # (T, V)
    pv = softmax(logits)
    emb = wb_ref[H:H + V, :]                         # (V, E) bf16
    ffn = jnp.dot(pv.astype(bf16), emb, preferred_element_type=f32)

    o_ref[...] = x + ffn                             # residual 2 (f32)


def symbolic_transformer_block(x, params, n_head):
    B, T, E = x.shape
    hd = E // n_head
    H = params["w_fc"].shape[1]
    V = params["vocab_emb"].shape[0]
    f32, bf16 = jnp.float32, jnp.bfloat16

    q_scale = 1.0 / math.sqrt(hd)                    # folded into Q weights/bias
    e_scale = 1.0 / math.sqrt(E)                     # folded into proj weights/bias

    # ---- trace-time parameter packing (runs once, outside the kernel) ----
    w_qkv = params["w_qkv"].astype(f32)
    w_qkv = jnp.concatenate([w_qkv[:, :E] * q_scale, w_qkv[:, E:]], axis=1)
    emb_f32 = params["vocab_emb"].astype(f32)
    # Single bf16 weight slab with E rows: [w_qkv | w_o | w_fc | emb^T].
    wa = jnp.concatenate([w_qkv,
                          params["w_o"].astype(f32),
                          params["w_fc"].astype(f32),
                          emb_f32.T], axis=1).astype(bf16)        # (E, 4E+H+V)
    # Second bf16 slab with E columns: [w_pr ; emb].
    wb = jnp.concatenate([params["w_pr"].astype(f32) * e_scale,
                          emb_f32], axis=0).astype(bf16)          # (H+V, E)

    b_qkv = params["b_qkv"].reshape(3 * E).astype(f32)
    b_qkv = jnp.concatenate([b_qkv[:E] * q_scale, b_qkv[E:]])
    b_o = params["b_o"].reshape(E).astype(f32)
    b_fc = params["b_fc"].reshape(H).astype(f32)
    b_pr = params["b_pr"].reshape(E).astype(f32) * e_scale

    bw = max(3 * E, H)
    pad = lambda v: jnp.pad(v, (0, bw - v.shape[0]))
    bias = jnp.stack([pad(b_qkv), pad(b_o), pad(b_fc), pad(b_pr)], axis=0)  # (4, bw)

    aff = jnp.stack([params["g1"].reshape(E), params["b1"].reshape(E),
                     params["g2"].reshape(E), params["b2"].reshape(E)],
                    axis=0).astype(f32)                            # (4, E)

    # Block-diagonal per-head averaging matrix for ChannelNorm.
    avg = jnp.kron(jnp.eye(n_head, dtype=f32),
                   jnp.full((hd, hd), 1.0 / hd, dtype=f32))        # (E, E)

    x2 = x.reshape(B * T, E).astype(f32)

    def fullspec(a):
        nd = a.ndim
        return pl.BlockSpec(a.shape, lambda b, _nd=nd: (0,) * _nd)

    kernel = functools.partial(_kernel, n_head, H, V)

    y2 = pl.pallas_call(
        kernel,
        out_shape=jax.ShapeDtypeStruct((B * T, E), f32),
        grid_spec=pltpu.PrefetchScalarGridSpec(
            num_scalar_prefetch=0,
            grid=(B,),                                # one sequence per step
            in_specs=[pl.BlockSpec((T, E), lambda b: (b, 0)),
                      fullspec(wa), fullspec(wb), fullspec(aff),
                      fullspec(bias), fullspec(avg)],
            out_specs=pl.BlockSpec((T, E), lambda b: (b, 0)),
        ),
        compiler_params=pltpu.CompilerParams(
            dimension_semantics=("parallel",),        # independent sequences
        ),
    )(x2, wa, wb, aff, bias, avg)
    return y2.reshape(B, T, E)


if __name__ == "__main__":
    # config: n_embd=32, n_head=4, block_size (seq)=8, vocab_size=64, bias=True
    B, T, E, NH, V = 2, 8, 32, 4, 64
    H = 4 * E

    key = jax.random.PRNGKey(0)
    ks = jax.random.split(key, 8)

    params = {
        "g1": jnp.ones((1, E), jnp.float32),
        "b1": jnp.zeros((1, E), jnp.float32),
        "g2": jnp.ones((1, E), jnp.float32),
        "b2": jnp.zeros((1, E), jnp.float32),
        "w_qkv": 0.02 * jax.random.normal(ks[0], (E, 3 * E), jnp.float32),
        "b_qkv": jnp.zeros((1, 3 * E), jnp.float32),
        "w_o": 0.02 * jax.random.normal(ks[1], (E, E), jnp.float32),
        "b_o": jnp.zeros((1, E), jnp.float32),
        "w_fc": 0.02 * jax.random.normal(ks[2], (E, H), jnp.float32),
        "b_fc": jnp.zeros((1, H), jnp.float32),
        "w_pr": 0.02 * jax.random.normal(ks[3], (H, E), jnp.float32),
        "b_pr": jnp.zeros((1, E), jnp.float32),
        "vocab_emb": 0.02 * jax.random.normal(ks[4], (V, E), jnp.float32),
    }
    x = jax.random.normal(ks[5], (B, T, E), jnp.float32)

    y = symbolic_transformer_block(x, params, n_head=NH)
    y = jax.block_until_ready(y)
    assert y.shape == (B, T, E) and y.dtype == jnp.float32
    assert bool(jnp.all(jnp.isfinite(y)))
    print("KERNEL_OK")
</pallas_src>

<mosaic_0001>
module attributes {stable_mosaic.version = 11 : i64} {
  func.func @_kernel(%arg0: i32, %arg1: memref<8x32xf32, #tpu.memory_space<vmem>>, %arg2: memref<32x320xbf16, #tpu.memory_space<vmem>>, %arg3: memref<192x32xbf16, #tpu.memory_space<vmem>>, %arg4: memref<4x32xf32, #tpu.memory_space<vmem>>, %arg5: memref<4x128xf32, #tpu.memory_space<vmem>>, %arg6: memref<32x32xf32, #tpu.memory_space<vmem>>, %arg7: memref<8x32xf32, #tpu.memory_space<vmem>>) attributes {dimension_semantics = [#tpu.dimension_semantics<parallel>], iteration_bounds = array<i64: 2>, scalar_prefetch = 0 : i64, scratch_operands = 0 : i64, tpu.core_type = #tpu.core_type<tc>, window_params = [{transform_indices = @transform_0, window_bounds = array<i64: 8, 32>}, {pipeline_mode = #tpu.pipeline_mode<synchronous>, transform_indices = @transform_1, window_bounds = array<i64: 32, 320>}, {pipeline_mode = #tpu.pipeline_mode<synchronous>, transform_indices = @transform_2, window_bounds = array<i64: 192, 32>}, {pipeline_mode = #tpu.pipeline_mode<synchronous>, transform_indices = @transform_3, window_bounds = array<i64: 4, 32>}, {pipeline_mode = #tpu.pipeline_mode<synchronous>, transform_indices = @transform_4, window_bounds = array<i64: 4, 128>}, {pipeline_mode = #tpu.pipeline_mode<synchronous>, transform_indices = @transform_5, window_bounds = array<i64: 32, 32>}, {transform_indices = @transform_6, window_bounds = array<i64: 8, 32>}]} {
    %c0 = arith.constant 0 : index
    %c0_0 = arith.constant 0 : index
    %0 = vector.load %arg1[%c0, %c0_0] : memref<8x32xf32, #tpu.memory_space<vmem>>, vector<8x32xf32>
    %c0_1 = arith.constant 0 : index
    %c0_2 = arith.constant 0 : index
    %1 = vector.load %arg6[%c0_1, %c0_2] : memref<32x32xf32, #tpu.memory_space<vmem>>, vector<32x32xf32>
    %c0_3 = arith.constant 0 : index
    %c0_4 = arith.constant 0 : index
    %2 = vector.load %arg4[%c0_3, %c0_4] : memref<4x32xf32, #tpu.memory_space<vmem>>, vector<1x32xf32>
    %c1 = arith.constant 1 : index
    %c0_5 = arith.constant 0 : index
    %3 = vector.load %arg4[%c1, %c0_5] : memref<4x32xf32, #tpu.memory_space<vmem>>, vector<1x32xf32>
    %c2 = arith.constant 2 : index
    %c0_6 = arith.constant 0 : index
    %4 = vector.load %arg4[%c2, %c0_6] : memref<4x32xf32, #tpu.memory_space<vmem>>, vector<1x32xf32>
    %c3 = arith.constant 3 : index
    %c0_7 = arith.constant 0 : index
    %5 = vector.load %arg4[%c3, %c0_7] : memref<4x32xf32, #tpu.memory_space<vmem>>, vector<1x32xf32>
    %6 = arith.mulf %0, %0 : vector<8x32xf32>
    %7 = tpu.concatenate %0, %6 in 0 : vector<8x32xf32>, vector<8x32xf32> -> vector<16x32xf32>
    %cst = arith.constant dense<0.000000e+00> : vector<16x32xf32>
    %8 = tpu.matmul %7, %1, %cst {dimension_numbers = #tpu.dot_dimension_numbers<[1], [0], [0], [1], [0, 0, 1, 1], [], []>} : vector<16x32xf32>, vector<32x32xf32>, vector<16x32xf32> -> vector<16x32xf32>
    %9 = vector.extract_strided_slice %8 {offsets = [0, 0], sizes = [8, 32], strides = [1, 1]} : vector<16x32xf32> to vector<8x32xf32>
    %10 = vector.extract_strided_slice %8 {offsets = [8, 0], sizes = [8, 32], strides = [1, 1]} : vector<16x32xf32> to vector<8x32xf32>
    %11 = arith.mulf %9, %9 : vector<8x32xf32>
    %12 = arith.subf %10, %11 : vector<8x32xf32>
    %cst_8 = arith.constant 0.000000e+00 : f32
    %13 = vector.broadcast %cst_8 : f32 to vector<8x32xf32>
    %14 = arith.maximumf %12, %13 : vector<8x32xf32>
    %15 = arith.subf %0, %9 : vector<8x32xf32>
    %cst_9 = arith.constant 9.99999974E-6 : f32
    %16 = vector.broadcast %cst_9 : f32 to vector<8x32xf32>
    %17 = arith.addf %14, %16 : vector<8x32xf32>
    %18 = math.rsqrt %17 : vector<8x32xf32>
    %19 = arith.mulf %15, %18 : vector<8x32xf32>
    %20 = vector.broadcast %2 : vector<1x32xf32> to vector<8x32xf32>
    %21 = arith.mulf %19, %20 : vector<8x32xf32>
    %22 = vector.broadcast %3 : vector<1x32xf32> to vector<8x32xf32>
    %23 = arith.addf %21, %22 : vector<8x32xf32>
    %c0_10 = arith.constant 0 : index
    %c0_11 = arith.constant 0 : index
    %24 = vector.load %arg2[%c0_10, %c0_11] : memref<32x320xbf16, #tpu.memory_space<vmem>>, vector<32x96xbf16>
    %25 = arith.truncf %23 : vector<8x32xf32> to vector<8x32xbf16>
    %cst_12 = arith.constant dense<0.000000e+00> : vector<8x96xf32>
    %26 = tpu.matmul %25, %24, %cst_12 {dimension_numbers = #tpu.dot_dimension_numbers<[1], [0], [0], [1], [0, 0, 1, 1], [], []>} : vector<8x32xbf16>, vector<32x96xbf16>, vector<8x96xf32> -> vector<8x96xf32>
    %c0_13 = arith.constant 0 : index
    %c0_14 = arith.constant 0 : index
    %27 = vector.load %arg5[%c0_13, %c0_14] : memref<4x128xf32, #tpu.memory_space<vmem>>, vector<1x96xf32>
    %28 = vector.broadcast %27 : vector<1x96xf32> to vector<8x96xf32>
    %29 = arith.addf %26, %28 : vector<8x96xf32>
    %30 = vector.extract_strided_slice %29 {offsets = [0, 0], sizes = [8, 8], strides = [1, 1]} : vector<8x96xf32> to vector<8x8xf32>
    %31 = vector.extract_strided_slice %29 {offsets = [0, 8], sizes = [8, 8], strides = [1, 1]} : vector<8x96xf32> to vector<8x8xf32>
    %32 = vector.extract_strided_slice %29 {offsets = [0, 16], sizes = [8, 8], strides = [1, 1]} : vector<8x96xf32> to vector<8x8xf32>
    %33 = vector.extract_strided_slice %29 {offsets = [0, 24], sizes = [8, 8], strides = [1, 1]} : vector<8x96xf32> to vector<8x8xf32>
    %34 = vector.shape_cast %30 : vector<8x8xf32> to vector<1x8x8xf32>
    %35 = vector.shape_cast %31 : vector<8x8xf32> to vector<1x8x8xf32>
    %36 = vector.shape_cast %32 : vector<8x8xf32> to vector<1x8x8xf32>
    %37 = vector.shape_cast %33 : vector<8x8xf32> to vector<1x8x8xf32>
    %38 = tpu.concatenate %34, %35, %36, %37 in 0 : vector<1x8x8xf32>, vector<1x8x8xf32>, vector<1x8x8xf32>, vector<1x8x8xf32> -> vector<4x8x8xf32>
    %39 = vector.extract_strided_slice %29 {offsets = [0, 32], sizes = [8, 8], strides = [1, 1]} : vector<8x96xf32> to vector<8x8xf32>
    %40 = vector.extract_strided_slice %29 {offsets = [0, 40], sizes = [8, 8], strides = [1, 1]} : vector<8x96xf32> to vector<8x8xf32>
    %41 = vector.extract_strided_slice %29 {offsets = [0, 48], sizes = [8, 8], strides = [1, 1]} : vector<8x96xf32> to vector<8x8xf32>
    %42 = vector.extract_strided_slice %29 {offsets = [0, 56], sizes = [8, 8], strides = [1, 1]} : vector<8x96xf32> to vector<8x8xf32>
    %43 = vector.shape_cast %39 : vector<8x8xf32> to vector<1x8x8xf32>
    %44 = vector.shape_cast %40 : vector<8x8xf32> to vector<1x8x8xf32>
    %45 = vector.shape_cast %41 : vector<8x8xf32> to vector<1x8x8xf32>
    %46 = vector.shape_cast %42 : vector<8x8xf32> to vector<1x8x8xf32>
    %47 = tpu.concatenate %43, %44, %45, %46 in 0 : vector<1x8x8xf32>, vector<1x8x8xf32>, vector<1x8x8xf32>, vector<1x8x8xf32> -> vector<4x8x8xf32>
    %48 = vector.extract_strided_slice %29 {offsets = [0, 64], sizes = [8, 8], strides = [1, 1]} : vector<8x96xf32> to vector<8x8xf32>
    %49 = vector.extract_strided_slice %29 {offsets = [0, 72], sizes = [8, 8], strides = [1, 1]} : vector<8x96xf32> to vector<8x8xf32>
    %50 = vector.extract_strided_slice %29 {offsets = [0, 80], sizes = [8, 8], strides = [1, 1]} : vector<8x96xf32> to vector<8x8xf32>
    %51 = vector.extract_strided_slice %29 {offsets = [0, 88], sizes = [8, 8], strides = [1, 1]} : vector<8x96xf32> to vector<8x8xf32>
    %52 = vector.shape_cast %48 : vector<8x8xf32> to vector<1x8x8xf32>
    %53 = vector.shape_cast %49 : vector<8x8xf32> to vector<1x8x8xf32>
    %54 = vector.shape_cast %50 : vector<8x8xf32> to vector<1x8x8xf32>
    %55 = vector.shape_cast %51 : vector<8x8xf32> to vector<1x8x8xf32>
    %56 = tpu.concatenate %52, %53, %54, %55 in 0 : vector<1x8x8xf32>, vector<1x8x8xf32>, vector<1x8x8xf32>, vector<1x8x8xf32> -> vector<4x8x8xf32>
    %57 = arith.truncf %38 : vector<4x8x8xf32> to vector<4x8x8xbf16>
    %58 = arith.truncf %47 : vector<4x8x8xf32> to vector<4x8x8xbf16>
    "tpu.trace_start"() <{level = 10 : i32, message = "hqd,hkd->hqk"}> : () -> ()
    %cst_15 = arith.constant dense<0.000000e+00> : vector<4x8x8xf32>
    %59 = tpu.matmul %57, %58, %cst_15 {dimension_numbers = #tpu.dot_dimension_numbers<[2], [2], [1], [1], [0, 0, 0, 1, 1, 1], [0], [0]>} : vector<4x8x8xbf16>, vector<4x8x8xbf16>, vector<4x8x8xf32> -> vector<4x8x8xf32>
    "tpu.trace_stop"() : () -> ()
    %60 = tpu.iota {dimensions = array<i32: 0>} : vector<8x8xi32>
    %61 = tpu.iota {dimensions = array<i32: 1>} : vector<8x8xi32>
    %62 = arith.cmpi sge, %60, %61 : vector<8x8xi32>
    %63 = vector.shape_cast %62 : vector<8x8xi1> to vector<1x8x8xi1>
    %cst_16 = arith.constant -1.000000e+30 : f32
    %64 = vector.shape_cast %63 : vector<1x8x8xi1> to vector<1x8x8xi1>
    %65 = vector.broadcast %64 : vector<1x8x8xi1> to vector<4x8x8xi1>
    %66 = vector.broadcast %cst_16 : f32 to vector<4x8x8xf32>
    %67 = arith.select %65, %59, %66 : vector<4x8x8xi1>, vector<4x8x8xf32>
    %cst_17 = arith.constant dense<0xFF800000> : vector<4x8xf32>
    %68 = vector.multi_reduction <maximumf>, %67, %cst_17 [2] : vector<4x8x8xf32> to vector<4x8xf32>
    %69 = vector.shape_cast %68 : vector<4x8xf32> to vector<4x8x1xf32>
    %70 = vector.broadcast %69 : vector<4x8x1xf32> to vector<4x8x8xf32>
    %71 = arith.subf %67, %70 : vector<4x8x8xf32>
    %72 = math.exp %71 : vector<4x8x8xf32>
    %cst_18 = arith.constant dense<0.000000e+00> : vector<4x8xf32>
    %73 = vector.multi_reduction <add>, %72, %cst_18 [2] : vector<4x8x8xf32> to vector<4x8xf32>
    %74 = vector.shape_cast %73 : vector<4x8xf32> to vector<4x8x1xf32>
    %75 = vector.broadcast %74 : vector<4x8x1xf32> to vector<4x8x8xf32>
    %76 = arith.divf %72, %75 : vector<4x8x8xf32>
    %77 = arith.truncf %76 : vector<4x8x8xf32> to vector<4x8x8xbf16>
    %78 = arith.truncf %56 : vector<4x8x8xf32> to vector<4x8x8xbf16>
    "tpu.trace_start"() <{level = 10 : i32, message = "hqk,hkd->hqd"}> : () -> ()
    %cst_19 = arith.constant dense<0.000000e+00> : vector<4x8x8xf32>
    %79 = tpu.matmul %77, %78, %cst_19 {dimension_numbers = #tpu.dot_dimension_numbers<[2], [1], [1], [2], [0, 0, 0, 1, 1, 2], [0], [0]>} : vector<4x8x8xbf16>, vector<4x8x8xbf16>, vector<4x8x8xf32> -> vector<4x8x8xf32>
    "tpu.trace_stop"() : () -> ()
    %80 = vector.extract_strided_slice %79 {offsets = [0, 0, 0], sizes = [1, 8, 8], strides = [1, 1, 1]} : vector<4x8x8xf32> to vector<1x8x8xf32>
    %81 = vector.shape_cast %80 : vector<1x8x8xf32> to vector<8x8xf32>
    %82 = vector.extract_strided_slice %79 {offsets = [1, 0, 0], sizes = [1, 8, 8], strides = [1, 1, 1]} : vector<4x8x8xf32> to vector<1x8x8xf32>
    %83 = vector.shape_cast %82 : vector<1x8x8xf32> to vector<8x8xf32>
    %84 = vector.extract_strided_slice %79 {offsets = [2, 0, 0], sizes = [1, 8, 8], strides = [1, 1, 1]} : vector<4x8x8xf32> to vector<1x8x8xf32>
    %85 = vector.shape_cast %84 : vector<1x8x8xf32> to vector<8x8xf32>
    %86 = vector.extract_strided_slice %79 {offsets = [3, 0, 0], sizes = [1, 8, 8], strides = [1, 1, 1]} : vector<4x8x8xf32> to vector<1x8x8xf32>
    %87 = vector.shape_cast %86 : vector<1x8x8xf32> to vector<8x8xf32>
    %88 = tpu.concatenate %81, %83, %85, %87 in 1 : vector<8x8xf32>, vector<8x8xf32>, vector<8x8xf32>, vector<8x8xf32> -> vector<8x32xf32>
    %c0_20 = arith.constant 0 : index
    %c96 = arith.constant 96 : index
    %89 = vector.load %arg2[%c0_20, %c96] : memref<32x320xbf16, #tpu.memory_space<vmem>>, vector<32x32xbf16>
    %90 = arith.truncf %88 : vector<8x32xf32> to vector<8x32xbf16>
    %cst_21 = arith.constant dense<0.000000e+00> : vector<8x32xf32>
    %91 = tpu.matmul %90, %89, %cst_21 {dimension_numbers = #tpu.dot_dimension_numbers<[1], [0], [0], [1], [0, 0, 1, 1], [], []>} : vector<8x32xbf16>, vector<32x32xbf16>, vector<8x32xf32> -> vector<8x32xf32>
    %c1_22 = arith.constant 1 : index
    %c0_23 = arith.constant 0 : index
    %92 = vector.load %arg5[%c1_22, %c0_23] : memref<4x128xf32, #tpu.memory_space<vmem>>, vector<1x32xf32>
    %93 = vector.broadcast %92 : vector<1x32xf32> to vector<8x32xf32>
    %94 = arith.addf %91, %93 : vector<8x32xf32>
    %95 = arith.addf %0, %94 : vector<8x32xf32>
    %96 = arith.mulf %95, %95 : vector<8x32xf32>
    %97 = tpu.concatenate %95, %96 in 0 : vector<8x32xf32>, vector<8x32xf32> -> vector<16x32xf32>
    %cst_24 = arith.constant dense<0.000000e+00> : vector<16x32xf32>
    %98 = tpu.matmul %97, %1, %cst_24 {dimension_numbers = #tpu.dot_dimension_numbers<[1], [0], [0], [1], [0, 0, 1, 1], [], []>} : vector<16x32xf32>, vector<32x32xf32>, vector<16x32xf32> -> vector<16x32xf32>
    %99 = vector.extract_strided_slice %98 {offsets = [0, 0], sizes = [8, 32], strides = [1, 1]} : vector<16x32xf32> to vector<8x32xf32>
    %100 = vector.extract_strided_slice %98 {offsets = [8, 0], sizes = [8, 32], strides = [1, 1]} : vector<16x32xf32> to vector<8x32xf32>
    %101 = arith.mulf %99, %99 : vector<8x32xf32>
    %102 = arith.subf %100, %101 : vector<8x32xf32>
    %cst_25 = arith.constant 0.000000e+00 : f32
    %103 = vector.broadcast %cst_25 : f32 to vector<8x32xf32>
    %104 = arith.maximumf %102, %103 : vector<8x32xf32>
    %105 = arith.subf %95, %99 : vector<8x32xf32>
    %cst_26 = arith.constant 9.99999974E-6 : f32
    %106 = vector.broadcast %cst_26 : f32 to vector<8x32xf32>
    %107 = arith.addf %104, %106 : vector<8x32xf32>
    %108 = math.rsqrt %107 : vector<8x32xf32>
    %109 = arith.mulf %105, %108 : vector<8x32xf32>
    %110 = vector.broadcast %4 : vector<1x32xf32> to vector<8x32xf32>
    %111 = arith.mulf %109, %110 : vector<8x32xf32>
    %112 = vector.broadcast %5 : vector<1x32xf32> to vector<8x32xf32>
    %113 = arith.addf %111, %112 : vector<8x32xf32>
    %c0_27 = arith.constant 0 : index
    %c128 = arith.constant 128 : index
    %114 = vector.load %arg2[%c0_27, %c128] : memref<32x320xbf16, #tpu.memory_space<vmem>>, vector<32x128xbf16>
    %115 = arith.truncf %113 : vector<8x32xf32> to vector<8x32xbf16>
    %cst_28 = arith.constant dense<0.000000e+00> : vector<8x128xf32>
    %116 = tpu.matmul %115, %114, %cst_28 {dimension_numbers = #tpu.dot_dimension_numbers<[1], [0], [0], [1], [0, 0, 1, 1], [], []>} : vector<8x32xbf16>, vector<32x128xbf16>, vector<8x128xf32> -> vector<8x128xf32>
    %c2_29 = arith.constant 2 : index
    %c0_30 = arith.constant 0 : index
    %117 = vector.load %arg5[%c2_29, %c0_30] : memref<4x128xf32, #tpu.memory_space<vmem>>, vector<1x128xf32>
    %118 = vector.broadcast %117 : vector<1x128xf32> to vector<8x128xf32>
    %119 = arith.addf %116, %118 : vector<8x128xf32>
    %120 = arith.mulf %119, %119 : vector<8x128xf32>
    %121 = arith.mulf %119, %120 : vector<8x128xf32>
    %cst_31 = arith.constant 4.471500e-02 : f32
    %122 = vector.broadcast %cst_31 : f32 to vector<8x128xf32>
    %123 = arith.mulf %122, %121 : vector<8x128xf32>
    %124 = arith.addf %119, %123 : vector<8x128xf32>
    %cst_32 = arith.constant 0.797884583 : f32
    %125 = vector.broadcast %cst_32 : f32 to vector<8x128xf32>
    %126 = arith.mulf %125, %124 : vector<8x128xf32>
    %127 = math.tanh %126 : vector<8x128xf32>
    %cst_33 = arith.constant 1.000000e+00 : f32
    %128 = vector.broadcast %cst_33 : f32 to vector<8x128xf32>
    %129 = arith.addf %128, %127 : vector<8x128xf32>
    %cst_34 = arith.constant 5.000000e-01 : f32
    %130 = vector.broadcast %cst_34 : f32 to vector<8x128xf32>
    %131 = arith.mulf %130, %129 : vector<8x128xf32>
    %132 = arith.mulf %119, %131 : vector<8x128xf32>
    %c0_35 = arith.constant 0 : index
    %c0_36 = arith.constant 0 : index
    %133 = vector.load %arg3[%c0_35, %c0_36] : memref<192x32xbf16, #tpu.memory_space<vmem>>, vector<128x32xbf16>
    %134 = arith.truncf %132 : vector<8x128xf32> to vector<8x128xbf16>
    %cst_37 = arith.constant dense<0.000000e+00> : vector<8x32xf32>
    %135 = tpu.matmul %134, %133, %cst_37 {dimension_numbers = #tpu.dot_dimension_numbers<[1], [0], [0], [1], [0, 0, 1, 1], [], []>} : vector<8x128xbf16>, vector<128x32xbf16>, vector<8x32xf32> -> vector<8x32xf32>
    %c3_38 = arith.constant 3 : index
    %c0_39 = arith.constant 0 : index
    %136 = vector.load %arg5[%c3_38, %c0_39] : memref<4x128xf32, #tpu.memory_space<vmem>>, vector<1x32xf32>
    %137 = vector.broadcast %136 : vector<1x32xf32> to vector<8x32xf32>
    %138 = arith.addf %135, %137 : vector<8x32xf32>
    %c0_40 = arith.constant 0 : index
    %c256 = arith.constant 256 : index
    %139 = vector.load %arg2[%c0_40, %c256] : memref<32x320xbf16, #tpu.memory_space<vmem>>, vector<32x64xbf16>
    %140 = arith.truncf %138 : vector<8x32xf32> to vector<8x32xbf16>
    %cst_41 = arith.constant dense<0.000000e+00> : vector<8x64xf32>
    %141 = tpu.matmul %140, %139, %cst_41 {dimension_numbers = #tpu.dot_dimension_numbers<[1], [0], [0], [1], [0, 0, 1, 1], [], []>} : vector<8x32xbf16>, vector<32x64xbf16>, vector<8x64xf32> -> vector<8x64xf32>
    %cst_42 = arith.constant dense<0xFF800000> : vector<8xf32>
    %142 = vector.multi_reduction <maximumf>, %141, %cst_42 [1] : vector<8x64xf32> to vector<8xf32>
    %143 = vector.shape_cast %142 : vector<8xf32> to vector<8x1xf32>
    %144 = vector.broadcast %143 : vector<8x1xf32> to vector<8x64xf32>
    %145 = arith.subf %141, %144 : vector<8x64xf32>
    %146 = math.exp %145 : vector<8x64xf32>
    %cst_43 = arith.constant dense<0.000000e+00> : vector<8xf32>
    %147 = vector.multi_reduction <add>, %146, %cst_43 [1] : vector<8x64xf32> to vector<8xf32>
    %148 = vector.shape_cast %147 : vector<8xf32> to vector<8x1xf32>
    %149 = vector.broadcast %148 : vector<8x1xf32> to vector<8x64xf32>
    %150 = arith.divf %146, %149 : vector<8x64xf32>
    %c128_44 = arith.constant 128 : index
    %c0_45 = arith.constant 0 : index
    %151 = vector.load %arg3[%c128_44, %c0_45] : memref<192x32xbf16, #tpu.memory_space<vmem>>, vector<64x32xbf16>
    %152 = arith.truncf %150 : vector<8x64xf32> to vector<8x64xbf16>
    %cst_46 = arith.constant dense<0.000000e+00> : vector<8x32xf32>
    %153 = tpu.matmul %152, %151, %cst_46 {dimension_numbers = #tpu.dot_dimension_numbers<[1], [0], [0], [1], [0, 0, 1, 1], [], []>} : vector<8x64xbf16>, vector<64x32xbf16>, vector<8x32xf32> -> vector<8x32xf32>
    %154 = arith.addf %95, %153 : vector<8x32xf32>
    %c0_47 = arith.constant 0 : index
    %c0_48 = arith.constant 0 : index
    %155 = vector.load %arg7[%c0_47, %c0_48] : memref<8x32xf32, #tpu.memory_space<vmem>>, vector<8x32xf32>
    tpu.vector_store %arg7[%c0_47, %c0_48], %154 {strides = array<i32>} : memref<8x32xf32, #tpu.memory_space<vmem>>, vector<8x32xf32>,
    return
  }
  func.func @transform_0(%arg0: i32) -> (i32, i32) {
    %c0_i32 = arith.constant 0 : i32
    %c0_i32_0 = arith.constant 0 : i32
    return %arg0, %c0_i32 : i32, i32
  }
  func.func @transform_1(%arg0: i32) -> (i32, i32) {
    %c0_i32 = arith.constant 0 : i32
    %c0_i32_0 = arith.constant 0 : i32
    %c0_i32_1 = arith.constant 0 : i32
    return %c0_i32, %c0_i32_0 : i32, i32
  }
  func.func @transform_2(%arg0: i32) -> (i32, i32) {
    %c0_i32 = arith.constant 0 : i32
    %c0_i32_0 = arith.constant 0 : i32
    %c0_i32_1 = arith.constant 0 : i32
    return %c0_i32, %c0_i32_0 : i32, i32
  }
  func.func @transform_3(%arg0: i32) -> (i32, i32) {
    %c0_i32 = arith.constant 0 : i32
    %c0_i32_0 = arith.constant 0 : i32
    %c0_i32_1 = arith.constant 0 : i32
    return %c0_i32, %c0_i32_0 : i32, i32
  }
  func.func @transform_4(%arg0: i32) -> (i32, i32) {
    %c0_i32 = arith.constant 0 : i32
    %c0_i32_0 = arith.constant 0 : i32
    %c0_i32_1 = arith.constant 0 : i32
    return %c0_i32, %c0_i32_0 : i32, i32
  }
  func.func @transform_5(%arg0: i32) -> (i32, i32) {
    %c0_i32 = arith.constant 0 : i32
    %c0_i32_0 = arith.constant 0 : i32
    %c0_i32_1 = arith.constant 0 : i32
    return %c0_i32, %c0_i32_0 : i32, i32
  }
  func.func @transform_6(%arg0: i32) -> (i32, i32) {
    %c0_i32 = arith.constant 0 : i32
    %c0_i32_0 = arith.constant 0 : i32
    return %arg0, %c0_i32 : i32, i32
  }
}

</mosaic_0001>

<bundles_post_ra>
// kernel: tpu_custom_call.1
= control target key start
LH: loop header
LB: loop body
LE: loop exit
PB: predicated region body
PF: predicated region fallthrough
CT: control target
= control target key end

     0   :  { %11 = vsyncpa [#allocation3], 0  ;;  %s2287_s0 = inlined_call_operand.vmem [shape: f32[16,32], index: 0, kind: input, shape index: {}]   ;;  %s2288_s1 = inlined_call_operand.vmem [shape: bf16[32,320], index: 1, kind: input, shape index: {}]   ;;  %s2289_s2 = inlined_call_operand.vmem [shape: bf16[192,32], index: 2, kind: input, shape index: {}]   ;;  %s2290_s3 = inlined_call_operand.vmem [shape: f32[4,32], index: 3, kind: input, shape index: {}]   ;;  %s2291_s4 = inlined_call_operand.vmem [shape: f32[4,128], index: 4, kind: input, shape index: {}]   ;;  %s2292_s5 = inlined_call_operand.vmem [shape: f32[32,32], index: 5, kind: input, shape index: {}]   ;;  %s2293_s6 = inlined_call_operand.hbm [shape: f32[16,32], index: 6, kind: output, shape index: {}]  }
   0x1   :  { %13 = vsyncpa [#allocation3 + $0x1], 0  ;;  %s1944_s21 = smov 0   ;;  %s1946_s22 = smov 0  }
   0x2   :  { %s1948_s23 = smov 0   ;;  %s1950_s24 = smov 0  }
   0x3 LB: > { %s1965_s25 = sadd.s32 4294967295, %s1895_s24   ;;  %s1478_s26 = sadd.s32 4294967294, %s1895_s24   ;;  %s1895_s24 = sphi %s1950_s24, %s2299_s24   ;;  %s1891_s23 = sphi %s1948_s23, %s2298_s23   ;;  %s1887_s22 = sphi %s1946_s22, %s2297_s22   ;;  %s1883_s21 = sphi %s1944_s21, %s2296_s21  }
   0x4   : > { %s1969_s27 = sadd.s32 1, %s1895_s24   ;;  %s157_s28 = sadd.s32 1, %s1891_s23 }
   0x5   : > { %s154_s29 = ssub.s32 %s1895_s24, %s1969_s27  ;;  %p167_p0 = scmp.ne.s32.totalorder %s1891_s23, %s1887_s22 }
   0x6   : > { %p155_p1 = scmp.eq.s32.totalorder %s154_s29, 0  ;;  %p168_p2 = scmp.eq.s32.totalorder %s1965_s25, 1 }
   0x7   : > { %p173_p3 = scmp.ne.s32.totalorder %s1887_s22, %s1883_s21  ;;  %p174_p4 = scmp.eq.s32.totalorder %s1478_s26, 1 }
   0x8   : > { %s1980_s30 = scalar_select %p155_p1, %s1891_s23, %s157_s28  }
   0x9   : > { %p1982_p5 = por %p168_p2, %p167_p0  ;;  %p1986_p6 = por %p174_p4, %p173_p3 }
   0xa   : > { %p1481_p7 = scmp.ge.s32.totalorder %s1895_s24, 1  ;;  %p214_p8 = scmp.lt.s32.totalorder %s1895_s24, 3 }
   0xc   : > { %p215_p9 = pnand %p1481_p7, %p214_p8 }
   0xd   : > { %v249_v0 = vld [vmem:[%s2292_s5] sm:$0xff] (!%p215_p9)  ;;  %v250_v1 = vld [vmem:[%s2292_s5 + $0x8] sm:$0xff] (!%p215_p9)  ;;  %v251_v2 = vld [vmem:[%s2292_s5 + $0x10] sm:$0xff] (!%p215_p9)  ;;  %p243_p10 = scmp.lt.s32.totalorder (!%p215_p9), %s1965_s25, 1  ;;  %vm258_vm0 = vcmask (!%p215_p9), 261120   ;;  %v1897_v9 = vmov (!%p215_p9), 0.0   ;;  %v633_v46 = vlaneseq (!%p215_p9) }
   0xe   : > { %218 = sbr.rel (%p215_p9) target bundleno = 3262 (0xcbe), region = 44  ;;  %v2002_v3 = vpack.c.bf16 (!%p215_p9), %v250_v1, %v249_v0  ;;  %v252_v4 = vld [vmem:[%s2292_s5 + $0x18] sm:$0xff] (!%p215_p9)  ;;  %v1787_v8 = vld [vmem:[%s2288_s1] ss:$12 sps:$4 sm:$0xff] (!%p215_p9)   ;;  %1598 = vmatprep.subr.bf16.mxu1 (!%p215_p9), %v1897_v9  ;;  %vm1898_vm1 = vmmov (!%p215_p9), 0   ;;  %s1901_s19 = smov (!%p215_p9), 112  }
   0xf   : > { %v2007_v5 = vpack.c.bf16 (!%p215_p9), %v252_v4, %v251_v2  ;;  %1599 = vmatpush3.bf16.msra.mxu1 (!%p215_p9), %v1787_v8  ;;  %v1788_v10 = vld [vmem:[%s2288_s1 + $0x18] ss:$12 sps:$4 sm:$0xff] (!%p215_p9)   ;;  %1602 = vmatprep.mubr.msk.bf16.mxu1 (!%p215_p9), %vm1898_vm1, %v1897_v9  ;;  %v1486_v19 = vld [vmem:[%s2290_s3] ss:$0 sm:$0xff] (!%p215_p9)  ;;  %v1487_v21 = vld [vmem:[%s2290_s3 + $0x1] ss:$0 sm:$0xff] (!%p215_p9) }
  0x10   : > { %1722 = vmatprep.subr.bf16.mxu0 (!%p215_p9), %v2002_v3  ;;  %1600 = vmatprep.subr.bf16.mxu1 (!%p215_p9), %v1897_v9  ;;  %v1488_v25 = vld [vmem:[%s2291_s4] ss:$0 sm:$0xff] (!%p215_p9)  ;;  %s1902_s20 = smov (!%p215_p9), 96   ;;  %vm439_vm2 = vcmask (!%p215_p9), 64512   ;;  %v634_v47 = vshrl.u32 (!%p215_p9), %v633_v46, 7  ;;  %v636_v48 = vand.u32 (!%p215_p9), 127, %v633_v46 }
  0x11   : > { %1724 = vmatpush3.bf16.msra.mxu0 (!%p215_p9), %v2002_v3  ;;  %vm697_vm4 = vcmask (!%p215_p9), 1043456   ;;  %s1904_s9 = smov (!%p215_p9), 32   ;;  %s1905_s10 = smov (!%p215_p9), 8   ;;  %vm898_vm5 = vcmask (!%p215_p9), 130048   ;;  %vm900_vm6 = vcmask (!%p215_p9), 195584   ;;  %vm1315_vm7 = vcmask (!%p215_p9), 523264  }
  0x12   : > { %1726 = vmatprep.subr.bf16.mxu0 (!%p215_p9), %v2007_v5  ;;  %vm637_vm3 = vcmp.ge.s32.totalorder (!%p215_p9), %v634_v47, %v636_v48  ;;  %s1906_s11 = smov (!%p215_p9), 16   ;;  %s1907_s14 = smov (!%p215_p9), 24  }
  0x13   : > { %1601 = vmatpush3.bf16.msra.mxu1 (!%p215_p9), %v1788_v10  ;;  %s240_s12 = sand.u32 (!%p215_p9), 1, %s1887_s22  }
  0x14   : > { %1612 = vmatprep.subr.bf16.mxu1 (!%p215_p9), %v1897_v9  ;;  %s1482_s13 = sshll.u32 (!%p215_p9), %s240_s12, 3 }
  0x15   : > { %s244_s17 = scalar_select %p243_p10, %s1965_s25, 1  ;;  %1728 = vmatpush3.bf16.msra.mxu0 %v2007_v5 }
  0x16   : > { %1606 = vmatprep.subr.bf16.mxu0 %v1897_v9  ;;  %s242_s15 = scalar_lea.vmem [#allocation2], %s1482_s13 }
  0x17   : > { %s1483_s18 = sshll.u32 %s244_s17, 3  ;;  %s1899_s17 = smov 104  }
  0x18   : > { %s246_s26 = scalar_lea.vmem %s2287_s0, %s1483_s18  ;;  %s1900_s18 = smov 120  }
  0x19   : > { %v2016_v6 = vld [vmem:[%s246_s26] sm:$0xff]  ;;  %s1903_s26 = smov 64   ;;  %s1419_s16 = sshll.u32 %s242_s15, 4  ;;  %s2246_s16 = int_to_ptr.vmem [resolvable:$true] %s1419_s16 }
  0x1a   : > { %1595 = vmatprep.mubr.msk.f32.mxu0 %vm258_vm0, %v2016_v6  ;;  %v257_v7 = vmul.f32 %v2016_v6, %v2016_v6 }
  0x1c   : > { %1596 = vmatmul.mubr.msk.f32.vlgmr.msra.gmra.mrb[0].mxu0 %vm258_vm0, %v257_v7 }
  0x1d   : > { %1608 = vmatprep.mubr.msk.bf16.mxu0 %vm1898_vm1, %v1897_v9 }
  0xef   : > { %v1597_v11 = vpop.f32.mrb[0].mxu0 }
  0xf0   : > { %v331_v12 = vpop.f32.mrb[1].mxu0 }
  0xf1   : > { %v340_v13 = vmul.f32 %v331_v12, %v331_v12  ;;  %v343_v17 = vsub.f32 %v2016_v6, %v331_v12 }
  0xf3   : > { %v341_v14 = vsub.f32 %v1597_v11, %v340_v13 }
  0xf5   : > { %v342_v15 = vmax.f32 %v341_v14, 0.0 }
  0xf7   : > { %v344_v16 = vadd.f32 1e-05, %v342_v15 }
  0xf9   : > { %1807 = vrsqrt.f32 %v344_v16 }
 0x103   : > { %v1808_v18 = vpop.eup %1807 }
 0x104   : > { %v346_v20 = vmul.f32 %v1808_v18, %v343_v17 }
 0x106   : > { %v351_v22 = vmul.f32 %v1486_v19, %v346_v20 }
 0x108   : > { %v356_v23 = vadd.f32 %v1487_v21, %v351_v22 }
 0x10a   : > { %v361_v24 = vpack.c.bf16 %v356_v23, %v356_v23 }
 0x10c   : > { %1603 = vmatmul.mubr.msk.bf16.vlgmr.msra.gmra.mrb[0].mxu1 %vm258_vm0, %v361_v24 }
 0x10d   : > { %1614 = vmatprep.mubr.msk.bf16.mxu1 %vm1898_vm1, %v1897_v9 }
 0x1df   : > { %v416_v26 = vpop.f32.mrb[0].mxu1 }
 0x1e0   : > { %v417_v27 = vadd.f32 %v1488_v25, %v416_v26  ;;  %v1604_v28 = vpop.f32.mrb[1].mxu1 }
 0x1e1   : > { %v419_v29 = vpop.f32.mrb[2].mxu1 }
 0x1e2   : > { %429 = vrot.lane.b32.xlu1 %v417_v27, %s1899_s17  ;;  %423 = vrot.lane.b32.xlu0 %v417_v27, %s1900_s18  ;;  %v1605_v30 = vpop.f32.mrb[3].mxu1  ;;  %v2051_v31 = vpack.c.bf16 %v417_v27, %v417_v27 }
 0x1e6   : > { %426 = vrot.lane.b32.xlu0 %v417_v27, %s1901_s19  ;;  %437 = vrot.lane.b32.xlu1 %v2051_v31, %s1902_s20 }
 0x254   : > { %v430_v32 = vpop.permute.xlu1 %429  ;;  %v424_v33 = vpop.permute.xlu0 %423 }
 0x255   : > { %v2054_v34 = vpack.c.bf16 %v424_v33, %v424_v33  ;;  %v2057_v37 = vpack.c.bf16 %v430_v32, %v430_v32 }
 0x257   : > { %487 = vrot.lane.b32.xlu0 %v2054_v34, %s1902_s20 }
 0x258   : > { %v427_v35 = vpop.permute.xlu0 %426  ;;  %v438_v36 = vpop.permute.xlu1 %437 }
 0x259   : > { %v2059_v38 = vpack.c.bf16 %v427_v35, %v427_v35  ;;  %v444_v39 = vsel %vm439_vm2, %v438_v36, 0 }
 0x25a   : > { %1607 = vmatpush3.bf16.xpose.msra.mxu0 %v444_v39 }
 0x25b   : > { %585 = vrot.lane.b32.xlu0 %v2057_v37, %s1902_s20  ;;  %536 = vrot.lane.b32.xlu1 %v2059_v38, %s1902_s20  ;;  %s1833_s20 = scalar_lea.vmem %s2246_s16, 128 }
 0x25c   : > { %1618 = vmatprep.subr.bf16.mxu0 %v1897_v9  ;;  %p1834_p11 = scmp.ne.s32.totalorder %s2246_s16, %s1833_s20 }
 0x25e   : > { %p1835_p12 = pnand %p1834_p11, %p1982_p5 }
 0x260   : > { %p1836_p13 = pneg %p1835_p12 }
 0x261   : > { %1609 = vmatmul.mubr.msk.bf16.vlgmr.msra.gmra.mrb[4].mxu0 %vm439_vm2, %v2051_v31 }
 0x262   : > { %1620 = vmatprep.mubr.msk.bf16.mxu0 %vm1898_vm1, %v1897_v9 }
 0x2c9   : > { %v488_v40 = vpop.permute.xlu0 %487 }
 0x2ca   : > { %v493_v41 = vsel %vm439_vm2, %v488_v40, 0 }
 0x2cb   : > { %1613 = vmatpush3.bf16.xpose.msra.mxu1 %v493_v41 }
 0x2cc   : > { %1624 = vmatprep.subr.bf16.mxu1 %v1897_v9 }
 0x2cd   : > { %v537_v42 = vpop.permute.xlu1 %536  ;;  %v586_v44 = vpop.permute.xlu0 %585 }
 0x2ce   : > { %v542_v43 = vsel %vm439_vm2, %v537_v42, 0  ;;  %v591_v45 = vsel %vm439_vm2, %v586_v44, 0 }
 0x2cf   : > { %1619 = vmatpush3.bf16.xpose.msra.mxu0 %v542_v43 }
 0x2d0   : > { %1630 = vmatprep.subr.bf16.mxu0 %v1897_v9 }
 0x2d2   : > { %1615 = vmatmul.mubr.msk.bf16.vlgmr.msra.gmra.mrb[4].mxu1 %vm439_vm2, %v2054_v34 }
 0x2d3   : > { %1625 = vmatpush3.bf16.xpose.msra.mxu1 %v591_v45  ;;  %1626 = vmatprep.mubr.msk.bf16.mxu1 %vm1898_vm1, %v1897_v9 }
 0x2d4   : > { %1636 = vmatprep.subr.bf16.mxu1 %v1897_v9 }
 0x2d6   : > { %1621 = vmatmul.mubr.msk.bf16.vlgmr.msra.gmra.mrb[8].mxu0 %vm439_vm2, %v2059_v38 }
 0x2d7   : > { %1632 = vmatprep.mubr.msk.bf16.mxu0 %vm1898_vm1, %v1897_v9 }
 0x2da   : > { %1627 = vmatmul.mubr.msk.bf16.vlgmr.msra.gmra.mrb[8].mxu1 %vm439_vm2, %v2057_v37 }
 0x2db   : > { %1638 = vmatprep.mubr.msk.bf16.mxu1 %vm1898_vm1, %v1897_v9 }
 0x334   : > { %v480_v49 = vpop.f32.mrb[4].mxu0 }
 0x335   : > { %v640_v50 = vsel %vm637_vm3, %v480_v49, -1e+30  ;;  %v1610_v51 = vpop.f32.mrb[5].mxu0 }
 0x336   : > { %v483_v52 = vpop.f32.mrb[6].mxu0  ;;  %v644_v53 = vsel %vm439_vm2, %v640_v50, -inf }
 0x337   : > { %645 = vmax.xlane.f32.xlu1 %v644_v53  ;;  %v1611_v54 = vpop.f32.mrb[7].mxu0 }
 0x3a5   : > { %v529_v55 = vpop.f32.mrb[4].mxu1 }
 0x3a6   : > { %v641_v56 = vsel %vm637_vm3, %v529_v55, -1e+30  ;;  %v1616_v57 = vpop.f32.mrb[5].mxu1 }
 0x3a7   : > { %v532_v58 = vpop.f32.mrb[6].mxu1  ;;  %v647_v59 = vsel %vm439_vm2, %v641_v56, -inf  ;;  %v1789_v57 = vld [vmem:[%s2288_s1] ss:$12 sps:$4 sm:$0xff]  }
 0x3a8   : > { %648 = vmax.xlane.f32.xlu0 %v647_v59  ;;  %v1617_v60 = vpop.f32.mrb[7].mxu1 }
 0x3a9   : > { %v578_v61 = vpop.f32.mrb[8].mxu0 }
 0x3aa   : > { %v642_v62 = vsel %vm637_vm3, %v578_v61, -1e+30  ;;  %v1622_v63 = vpop.f32.mrb[9].mxu0 }
 0x3ab   : > { %v581_v0 = vpop.f32.mrb[10].mxu0  ;;  %v650_v1 = vsel %vm439_vm2, %v642_v62, -inf }
 0x3ac   : > { %v1623_v2 = vpop.f32.mrb[11].mxu0  ;;  %651 = vmax.xlane.f32.xlu0 %v650_v1 }
 0x3ad   : > { %v627_v4 = vpop.f32.mrb[8].mxu1 }
 0x3ae   : > { %v643_v7 = vsel %vm637_vm3, %v627_v4, -1e+30  ;;  %v1628_v8 = vpop.f32.mrb[9].mxu1  ;;  %v1790_v4 = vld [vmem:[%s2288_s1 + $0x18] ss:$12 sps:$4 sm:$0xff]  }
 0x3af   : > { %v630_v10 = vpop.f32.mrb[10].mxu1  ;;  %v653_v11 = vsel %vm439_vm2, %v643_v7, -inf }
 0x3b0   : > { %654 = vmax.xlane.f32.xlu1 %v653_v11  ;;  %v1629_v12 = vpop.f32.mrb[11].mxu1 }
 0x3c1   : > { %741 = vrot.lane.b32.xlu1 %v2054_v34, %s1903_s26 }
 0x3c2   : > { %692 = vrot.lane.b32.xlu0 %v2051_v31, %s1903_s26 }
 0x3c4   : > { %v646_v13 = vpop.xlane.xlu1 %645 }
 0x3c5   : > { %v656_v14 = vsub.f32 %v640_v50, %v646_v13 }
 0x3c7   : > { %v660_v15 = vmul.f32 1.442695, %v656_v14 }
 0x3c9   : > { %1809 = vpow2.f32 %v660_v15 }
 0x3d3   : > { %v1810_v16 = vpop.eup %1809 }
 0x3d4   : > { %v668_v17 = vsel %vm439_vm2, %v1810_v16, 0.0 }
 0x3e1   : > { %669 = vadd.xlane.f32.xlu0 %v668_v17 }
 0x435   : > { %v649_v18 = vpop.xlane.xlu0 %648 }
 0x436   : > { %v657_v19 = vsub.f32 %v641_v56, %v649_v18 }
 0x438   : > { %v662_v20 = vmul.f32 1.442695, %v657_v19 }
 0x439   : > { %v652_v21 = vpop.xlane.xlu0 %651 }
 0x43a   : > { %1811 = vpow2.f32 %v662_v20  ;;  %v658_v22 = vsub.f32 %v642_v62, %v652_v21 }
 0x43c   : > { %v664_v23 = vmul.f32 1.442695, %v658_v22  ;;  %v1500_v22 = vld [vmem:[%s2291_s4 + $0x1] ss:$0 sm:$0xff] }
 0x43d   : > { %v693_v24 = vpop.permute.xlu0 %692  ;;  %v655_v25 = vpop.xlane.xlu1 %654 }
 0x43e   : > { %1813 = vpow2.f32 %v664_v23  ;;  %v699_v26 = vsel %vm697_vm4, %v693_v24, 0  ;;  %v659_v27 = vsub.f32 %v643_v7, %v655_v25 }
 0x43f   : > { %1631 = vmatpush3.bf16.msra.mxu0 %v699_v26 }
 0x440   : > { %v666_v28 = vmul.f32 1.442695, %v659_v27  ;;  %1642 = vmatprep.subr.bf16.mxu0 %v1897_v9 }
 0x441   : > { %v742_v29 = vpop.permute.xlu1 %741 }
 0x442   : > { %1815 = vpow2.f32 %v666_v28  ;;  %v747_v30 = vsel %vm697_vm4, %v742_v29, 0 }
 0x443   : > { %1637 = vmatpush3.bf16.msra.mxu1 %v747_v30  ;;  %v1791_v30 = vld [vmem:[%s2288_s1 + $0x4] ss:$12 sps:$4 sm:$0xff]  }
 0x444   : > { %v1812_v31 = vpop.eup %1811  ;;  %1648 = vmatprep.subr.bf16.mxu1 %v1897_v9 }
 0x445   : > { %v671_v32 = vsel %vm439_vm2, %v1812_v31, 0.0 }
 0x446   : > { %672 = vadd.xlane.f32.xlu1 %v671_v32 }
 0x448   : > { %v1814_v33 = vpop.eup %1813 }
 0x449   : > { %v674_v34 = vsel %vm439_vm2, %v1814_v33, 0.0 }
 0x44a   : > { %675 = vadd.xlane.f32.xlu0 %v674_v34 }
 0x44c   : > { %v1816_v35 = vpop.eup %1815 }
 0x44d   : > { %v677_v36 = vsel %vm439_vm2, %v1816_v35, 0.0 }
 0x44e   : > { %678 = vadd.xlane.f32.xlu1 %v677_v36 }
 0x45f   : > { %789 = vrot.lane.b32.xlu1 %v2059_v38, %s1903_s26 }
 0x460   : > { %837 = vrot.lane.b32.xlu0 %v2057_v37, %s1903_s26  ;;  %s1908_s26 = smov [#allocation2]  }
 0x461   : > { %s1837_s28 = sshll.u32 %s1908_s26, 4  ;;  %s1838_s28 = int_to_ptr.vmem [resolvable:$false] %s1837_s28 }
 0x462   : > { %s1839_s29 = scalar_lea.vmem %s1838_s28, 256  ;;  %p1840_p0 = scmp.lt.s32.totalorder %s2246_s16, %s1838_s28 }
 0x463   : > { %922 = vrot.lane.b32.xlu1 %v1789_v57, %s1904_s9  ;;  %p1841_p1 = scmp.lt.s32.totalorder %s1839_s29, %s1833_s20 }
 0x465   : > { %p1842_p2 = por %p1841_p1, %p1840_p0 }
 0x467   : > { %p1843_p3 = pnand %p1842_p2, %p1836_p13 }
 0x46e   : > { %v670_v39 = vpop.xlane.xlu0 %669 }
 0x46f   : > { %1817 = vrcp.f32 %v670_v39 }
 0x479   : > { %v1818_v40 = vpop.eup %1817 }
 0x47a   : > { %v681_v41 = vmul.f32 %v1818_v40, %v1810_v16 }
 0x47c   : > { %v688_v42 = vpack.c.bf16 %v681_v41, %v681_v41  ;;  %v1506_v41 = vld [vmem:[%s2290_s3 + $0x2] ss:$0 sm:$0xff] }
 0x47e   : > { %1633 = vmatmul.mubr.msk.bf16.vlgmr.msra.gmra.mrb[12].mxu0 %vm439_vm2, %v688_v42 }
 0x47f   : > { %1644 = vmatprep.mubr.msk.bf16.mxu0 %vm1898_vm1, %v1897_v9 }
 0x4d3   : > { %v673_v43 = vpop.xlane.xlu1 %672 }
 0x4d4   : > { %1819 = vrcp.f32 %v673_v43  ;;  %v1507_v43 = vld [vmem:[%s2290_s3 + $0x3] ss:$0 sm:$0xff] }
 0x4d7   : > { %v676_v44 = vpop.xlane.xlu0 %675 }
 0x4d8   : > { %1821 = vrcp.f32 %v676_v44 }
 0x4db   : > { %v679_v45 = vpop.xlane.xlu1 %678  ;;  %v838_v37 = vpop.permute.xlu0 %837 }
 0x4dc   : > { %1823 = vrcp.f32 %v679_v45  ;;  %v843_v52 = vsel %vm697_vm4, %v838_v37, 0  ;;  %v1795_v37 = vld [vmem:[%s2289_s2 + $0x10] sm:$0xff]  }
 0x4de   : > { %v1820_v38 = vpop.eup %1819 }
 0x4df   : > { %v683_v46 = vmul.f32 %v1820_v38, %v1812_v31  ;;  %v790_v47 = vpop.permute.xlu1 %789 }
 0x4e0   : > { %v795_v48 = vsel %vm697_vm4, %v790_v47, 0  ;;  %v1794_v47 = vld [vmem:[%s2289_s2 + $0x8] sm:$0xff]  }
 0x4e1   : > { %1643 = vmatpush3.bf16.msra.mxu0 %v795_v48  ;;  %v689_v49 = vpack.c.bf16 %v683_v46, %v683_v46  ;;  %v1793_v46 = vld [vmem:[%s2289_s2] sm:$0xff]   ;;  %v1796_v48 = vld [vmem:[%s2289_s2 + $0x18] sm:$0xff]  }
 0x4e2   : > { %v1822_v50 = vpop.eup %1821  ;;  %1654 = vmatprep.subr.bf16.mxu0 %v1897_v9 }
 0x4e3   : > { %v685_v51 = vmul.f32 %v1822_v50, %v1814_v33  ;;  %1639 = vmatmul.mubr.msk.bf16.vlgmr.msra.gmra.mrb[12].mxu1 %vm439_vm2, %v689_v49  ;;  %v923_v62 = vpop.permute.xlu1 %922  ;;  %v1797_v49 = vld [vmem:[%s2289_s2 + $0x20] sm:$0xff]   ;;  %v1798_v50 = vld [vmem:[%s2289_s2 + $0x28] sm:$0xff]  }
 0x4e4   : > { %1649 = vmatpush3.bf16.msra.mxu1 %v843_v52  ;;  %1650 = vmatprep.mubr.msk.bf16.mxu1 %vm1898_vm1, %v1897_v9  ;;  %v1800_v52 = vld [vmem:[%s2289_s2 + $0x38] sm:$0xff]  }
 0x4e5   : > { %v690_v53 = vpack.c.bf16 %v685_v51, %v685_v51  ;;  %1730 = vmatprep.subr.bf16.mxu1 %v2002_v3  ;;  %v1799_v51 = vld [vmem:[%s2289_s2 + $0x30] sm:$0xff]  }
 0x4e6   : > { %v1824_v54 = vpop.eup %1823 }
 0x4e7   : > { %v687_v55 = vmul.f32 %v1824_v54, %v1816_v35  ;;  %1645 = vmatmul.mubr.msk.bf16.vlgmr.msra.gmra.mrb[16].mxu0 %vm439_vm2, %v690_v53  ;;  %v1801_v53 = vld [vmem:[%s2288_s1 + $0x8] ss:$12 sps:$4 sm:$0xff]   ;;  %v1508_v54 = vld [vmem:[%s2291_s4 + $0x2] ss:$0 sm:$0xff] }
 0x4e8   : > { %1658 = vmatprep.mubr.msk.bf16.mxu0 %vm1898_vm1, %v1897_v9  ;;  %1655 = vmatpush3.bf16.msra.mxu0 %v923_v62 }
 0x4e9   : > { %v691_v56 = vpack.c.bf16 %v687_v55, %v687_v55  ;;  %1656 = vmatprep.subr.bf16.mxu0 %v1897_v9 }
 0x4eb   : > { %1651 = vmatmul.mubr.msk.bf16.vlgmr.msra.gmra.mrb[16].mxu1 %vm439_vm2, %v691_v56 }
 0x4ec   : > { %1732 = vmatpush3.bf16.msra.mxu1 %v2002_v3 }
 0x4ed   : > { %1734 = vmatprep.subr.bf16.mxu1 %v2007_v5 }
 0x4f0   : > { %1736 = vmatpush3.bf16.msra.mxu1 %v2007_v5 }
 0x4f1   : > { %1681 = vmatprep.subr.bf16.mxu1 %v1897_v9 }
 0x551   : > { %v735_v58 = vpop.f32.mrb[12].mxu0 }
 0x552   : > { %v1634_v59 = vpop.f32.mrb[13].mxu0 }
 0x553   : > { %v738_v60 = vpop.f32.mrb[14].mxu0 }
 0x554   : > { %v1635_v61 = vpop.f32.mrb[15].mxu0 }
 0x5b6   : > { %v783_v3 = vpop.f32.mrb[12].mxu1 }
 0x5b7   : > { %886 = vrot.lane.b32.xlu0 %v783_v3, %s1905_s10  ;;  %v1640_v5 = vpop.f32.mrb[13].mxu1 }
 0x5b8   : > { %v786_v63 = vpop.f32.mrb[14].mxu1 }
 0x5b9   : > { %v1641_v0 = vpop.f32.mrb[15].mxu1 }
 0x5ba   : > { %v831_v1 = vpop.f32.mrb[16].mxu0 }
 0x5bb   : > { %890 = vrot.lane.b32.xlu1 %v831_v1, %s1906_s11  ;;  %v1646_v2 = vpop.f32.mrb[17].mxu0 }
 0x5bc   : > { %v834_v7 = vpop.f32.mrb[18].mxu0 }
 0x5bd   : > { %v1647_v8 = vpop.f32.mrb[19].mxu0  ;;  %v1802_v7 = vld [vmem:[%s2288_s1 + $0x20] ss:$12 sps:$4 sm:$0xff]  }
 0x5be   : > { %v879_v10 = vpop.f32.mrb[16].mxu1  ;;  %v1512_v8 = vld [vmem:[%s2291_s4 + $0x3] ss:$0 sm:$0xff] }
 0x5bf   : > { %924 = vrot.lane.b32.xlu1 %v1790_v4, %s1904_s9  ;;  %894 = vrot.lane.b32.xlu0 %v879_v10, %s1907_s14  ;;  %v1652_v11 = vpop.f32.mrb[17].mxu1  ;;  %s1530_s14 = sshll.u32 %s1965_s25, 7  ;;  %s1406_s25 = scalar_lea.sflag [#allocation3], %s240_s12 }
 0x5c0   : > { %v882_v12 = vpop.f32.mrb[18].mxu1  ;;  %s2244_s19 = scalar_lea.hbm %s2293_s6, %s1530_s14 }
 0x5c1   : > { %v1653_v13 = vpop.f32.mrb[19].mxu1 }
 0x629   : > { %v887_v14 = vpop.permute.xlu0 %886 }
 0x62a   : > { %v897_v16 = vsel %vm439_vm2, %v735_v58, %v887_v14 }
 0x62d   : > { %v891_v15 = vpop.permute.xlu1 %890 }
 0x62e   : > { %v899_v17 = vsel %vm898_vm5, %v897_v16, %v891_v15 }
 0x631   : > { %v925_v18 = vpop.permute.xlu1 %924  ;;  %v895_v19 = vpop.permute.xlu0 %894 }
 0x632   : > { %v901_v20 = vsel %vm900_vm6, %v899_v17, %v895_v19  ;;  %1657 = vmatpush3.bf16.msra.mxu0 %v925_v18 }
 0x633   : > { %v906_v21 = vpack.c.bf16 %v901_v20, %v901_v20  ;;  %1673 = vmatprep.subr.bf16.mxu0 %v1897_v9 }
 0x635   : > { %1659 = vmatmul.mubr.msk.bf16.vlgmr.msra.gmra.mrb[20].mxu0 %vm258_vm0, %v906_v21 }
 0x636   : > { %1677 = vmatprep.mubr.msk.bf16.mxu0 %vm1898_vm1, %v1897_v9  ;;  %1674 = vmatpush3.bf16.msra.mxu0 %v1791_v30  ;;  %v1806_v30 = vld [vmem:[%s2289_s2 + $0x58] sm:$0xff]  }
 0x637   : > { %1675 = vmatprep.subr.bf16.mxu0 %v1897_v9 }
 0x708   : > { %v965_v23 = vpop.f32.mrb[20].mxu0 }
 0x709   : > { %v966_v24 = vadd.f32 %v1500_v22, %v965_v23  ;;  %v1660_v25 = vpop.f32.mrb[21].mxu0 }
 0x70a   : > { %v968_v26 = vpop.f32.mrb[22].mxu0 }
 0x70b   : > { %v2145_v27 = vadd.f32 %v966_v24, %v2016_v6  ;;  %v1661_v28 = vpop.f32.mrb[23].mxu0  ;;  %v1792_v6 = vld [vmem:[%s2288_s1 + $0x1c] ss:$12 sps:$4 sm:$0xff]   ;;  %v1803_v26 = vld [vmem:[%s2289_s2 + $0x40] sm:$0xff]  }
 0x70c   : > { %1676 = vmatpush3.bf16.msra.mxu0 %v1792_v6  ;;  %v1804_v28 = vld [vmem:[%s2289_s2 + $0x48] sm:$0xff]  }
 0x70d   : > { %v972_v29 = vmul.f32 %v2145_v27, %v2145_v27  ;;  %1670 = vmatprep.mubr.msk.f32.mxu1 %vm258_vm0, %v2145_v27  ;;  %1701 = vmatprep.subr.bf16.mxu0 %v1897_v9 }
 0x70f   : > { %1671 = vmatmul.mubr.msk.f32.vlgmr.msra.gmra.mrb[20].mxu1 %vm258_vm0, %v972_v29  ;;  %v1805_v29 = vld [vmem:[%s2289_s2 + $0x50] sm:$0xff]  }
 0x710   : > { %1697 = vmatprep.mubr.msk.bf16.mxu1 %vm1898_vm1, %v1897_v9  ;;  %1682 = vmatpush3.bf16.msra.mxu1 %v1793_v46 }
 0x711   : > { %1683 = vmatprep.subr.bf16.mxu1 %v1897_v9 }
 0x714   : > { %1684 = vmatpush3.bf16.msra.mxu1 %v1794_v47 }
 0x715   : > { %1685 = vmatprep.subr.bf16.mxu1 %v1897_v9 }
 0x718   : > { %1686 = vmatpush3.bf16.msra.mxu1 %v1795_v37 }
 0x719   : > { %1687 = vmatprep.subr.bf16.mxu1 %v1897_v9 }
 0x71c   : > { %1688 = vmatpush3.bf16.msra.mxu1 %v1796_v48 }
 0x71d   : > { %1689 = vmatprep.subr.bf16.mxu1 %v1897_v9 }
 0x720   : > { %1690 = vmatpush3.bf16.msra.mxu1 %v1797_v49 }
 0x721   : > { %1691 = vmatprep.subr.bf16.mxu1 %v1897_v9 }
 0x724   : > { %1692 = vmatpush3.bf16.msra.mxu1 %v1798_v50 }
 0x725   : > { %1693 = vmatprep.subr.bf16.mxu1 %v1897_v9 }
 0x728   : > { %1694 = vmatpush3.bf16.msra.mxu1 %v1799_v51 }
 0x729   : > { %1695 = vmatprep.subr.bf16.mxu1 %v1897_v9 }
 0x72c   : > { %1696 = vmatpush3.bf16.msra.mxu1 %v1800_v52 }
 0x7e2   : > { %v1672_v31 = vpop.f32.mrb[20].mxu1 }
 0x7e3   : > { %v1045_v32 = vpop.f32.mrb[21].mxu1 }
 0x7e4   : > { %v1054_v33 = vmul.f32 %v1045_v32, %v1045_v32  ;;  %v1057_v39 = vsub.f32 %v2145_v27, %v1045_v32 }
 0x7e6   : > { %v1055_v34 = vsub.f32 %v1672_v31, %v1054_v33 }
 0x7e8   : > { %v1056_v35 = vmax.f32 %v1055_v34, 0.0 }
 0x7ea   : > { %v1058_v36 = vadd.f32 1e-05, %v1056_v35 }
 0x7ec   : > { %1825 = vrsqrt.f32 %v1058_v36 }
 0x7f6   : > { %v1826_v40 = vpop.eup %1825 }
 0x7f7   : > { %v1060_v42 = vmul.f32 %v1826_v40, %v1057_v39 }
 0x7f9   : > { %v1065_v44 = vmul.f32 %v1506_v41, %v1060_v42 }
 0x7fb   : > { %v1070_v45 = vadd.f32 %v1507_v43, %v1065_v44 }
 0x7fd   : > { %v1075_v38 = vpack.c.bf16 %v1070_v45, %v1070_v45 }
 0x7ff   : > { %1678 = vmatmul.mubr.msk.bf16.vlgmr.msra.gmra.mrb[24].mxu0 %vm258_vm0, %v1075_v38 }
 0x800   : > { %1705 = vmatprep.mubr.msk.bf16.mxu0 %vm1898_vm1, %v1897_v9  ;;  %1702 = vmatpush3.bf16.msra.mxu0 %v1801_v53 }
 0x801   : > { %1703 = vmatprep.subr.bf16.mxu0 %v1897_v9 }
 0x804   : > { %1704 = vmatpush3.bf16.msra.mxu0 %v1802_v7 }
 0x805   : > { %1709 = vmatprep.subr.bf16.mxu0 %v1897_v9 }
 0x8d2   : > { %v1130_v55 = vpop.f32.mrb[24].mxu0 }
 0x8d3   : > { %v1131_v56 = vadd.f32 %v1508_v54, %v1130_v55  ;;  %v1679_v57 = vpop.f32.mrb[25].mxu0 }
 0x8d4   : > { %v1133_v58 = vpop.f32.mrb[26].mxu0 }
 0x8d5   : > { %v1136_v59 = vmul.f32 %v1131_v56, %v1131_v56  ;;  %v1680_v60 = vpop.f32.mrb[27].mxu0 }
 0x8d7   : > { %v1137_v61 = vmul.f32 %v1136_v59, %v1131_v56 }
 0x8d9   : > { %v1138_v62 = vmul.f32 0.044715, %v1137_v61 }
 0x8db   : > { %v1139_v3 = vadd.f32 %v1138_v62, %v1131_v56 }
 0x8dd   : > { %v1140_v5 = vmul.f32 0.7978846, %v1139_v3 }
 0x8df   : > { %1827 = vtanh.f32 %v1140_v5 }
 0x8e9   : > { %v1828_v63 = vpop.eup %1827 }
 0x8ea   : > { %v1142_v0 = vadd.f32 1.0, %v1828_v63 }
 0x8ec   : > { %v1143_v1 = vmul.f32 0.5, %v1142_v0 }
 0x8ee   : > { %v1144_v2 = vmul.f32 %v1143_v1, %v1131_v56 }
 0x8f0   : > { %v1161_v4 = vpack.c.bf16 %v1144_v2, %v1144_v2 }
 0x8f2   : > { %1698 = vmatmul.mubr.bf16.vlgmr.msra.gmra.mrb[24].mxu1 %v1161_v4 }
 0x9c5   : > { %v1249_v10 = vpop.f32.mrb[24].mxu1 }
 0x9c6   : > { %v1250_v11 = vadd.f32 %v1512_v8, %v1249_v10  ;;  %v1699_v12 = vpop.f32.mrb[25].mxu1 }
 0x9c7   : > { %v1252_v13 = vpop.f32.mrb[26].mxu1 }
 0x9c8   : > { %v1259_v14 = vpack.c.bf16 %v1250_v11, %v1250_v11  ;;  %v1700_v15 = vpop.f32.mrb[27].mxu1 }
 0x9ca   : > { %1706 = vmatmul.mubr.msk.bf16.vlgmr.msra.gmra.mrb[28].mxu0 %vm258_vm0, %v1259_v14 }
 0x9cb   : > { %1717 = vmatprep.mubr.msk.bf16.mxu0 %vm1898_vm1, %v1897_v9  ;;  %1710 = vmatpush3.bf16.msra.mxu0 %v1803_v26 }
 0x9cc   : > { %1711 = vmatprep.subr.bf16.mxu0 %v1897_v9 }
 0x9cf   : > { %1712 = vmatpush3.bf16.msra.mxu0 %v1804_v28 }
 0x9d0   : > { %1713 = vmatprep.subr.bf16.mxu0 %v1897_v9 }
 0x9d3   : > { %1714 = vmatpush3.bf16.msra.mxu0 %v1805_v29 }
 0x9d4   : > { %1715 = vmatprep.subr.bf16.mxu0 %v1897_v9 }
 0x9d7   : > { %1716 = vmatpush3.bf16.msra.mxu0 %v1806_v30 }
 0xa9d   : > { %v1309_v16 = vpop.f32.mrb[28].mxu0 }
 0xa9e   : > { %v1707_v17 = vpop.f32.mrb[29].mxu0  ;;  %v1316_v18 = vsel %vm1315_vm7, %v1309_v16, -inf }
 0xa9f   : > { %1317 = vmax.xlane.f32.xlu0 %v1316_v18  ;;  %v1312_v19 = vpop.f32.mrb[30].mxu0 }
 0xaa0   : > { %v1708_v20 = vpop.f32.mrb[31].mxu0 }
 0xb2c   : > { %v1318_v21 = vpop.xlane.xlu0 %1317 }
 0xb2d   : > { %v1319_v22 = vsub.f32 %v1309_v16, %v1318_v21 }
 0xb2f   : > { %v1320_v23 = vmul.f32 1.442695, %v1319_v22 }
 0xb31   : > { %1829 = vpow2.f32 %v1320_v23 }
 0xb3b   : > { %v1830_v24 = vpop.eup %1829 }
 0xb3c   : > { %v1322_v25 = vsel %vm1315_vm7, %v1830_v24, 0.0 }
 0xb3d   : > { %1323 = vadd.xlane.f32.xlu1 %v1322_v25 }
 0xbca   : > { %v1324_v6 = vpop.xlane.xlu1 %1323 }
 0xbcb   : > { %1831 = vrcp.f32 %v1324_v6 }
 0xbd5   : > { %v1832_v31 = vpop.eup %1831 }
 0xbd6   : > { %v1326_v32 = vmul.f32 %v1832_v31, %v1830_v24 }
 0xbd8   : > { %v1335_v33 = vpack.c.bf16 %v1326_v32, %v1326_v32 }
 0xbda   : > { %1718 = vmatmul.mubr.msk.bf16.vlgmr.msra.gmra.mrb[32].mxu0 %vm1315_vm7, %v1335_v33 }
 0xcad   : > { %v1397_v34 = vpop.f32.mrb[32].mxu0 }
 0xcae   : > { %v1403_v9 = vadd.f32 %v1397_v34, %v2145_v27  ;;  %v1719_v35 = vpop.f32.mrb[33].mxu0 }
 0xcaf   : > { %v1400_v36 = vpop.f32.mrb[34].mxu0 }
 0xcb0   : > { %v1720_v39 = vpop.f32.mrb[35].mxu0  ;;  %1404 = vst.msk [vmem:[%s242_s15] sm:$0xff] %vm258_vm0, %v1403_v9 }
 0xcb1   : > { %1846 = shalt.err (!%p1843_p3)
}
 0xcb2   : > { %s1847_s9 = scalar_lea.hbm %s2244_s19, 128  ;;  %s1851_s12 = scalar_lea.hbm %s2293_s6, 256 }
 0xcb3   : > { %p1848_p4 = scmp.ne.s32.totalorder %s2244_s19, %s1847_s9  ;;  %p1852_p9 = scmp.lt.u32.totalorder %s2244_s19, %s2293_s6 }
 0xcb4   : > { %p1853_p10 = scmp.lt.u32.totalorder %s1851_s12, %s1847_s9  ;;  %p1855_p12 = scmp.lt.u32.totalorder %s1847_s9, %s2244_s19 }
 0xcb5   : > { %p1849_p7 = pnand %p1848_p4, %p1982_p5 }
 0xcb6   : > { %p1854_p11 = por %p1853_p10, %p1852_p9 }
 0xcb7   : > { %p1850_p8 = pneg %p1849_p7 }
 0xcb8   : > { %p1856_p13 = por %p1855_p12, %p1854_p11 }
 0xcba   : > { %p1857_p0 = pnand %p1856_p13, %p1850_p8 }
 0xcbc   : > { %1860 = shalt.err (!%p1857_p0)
}
 0xcbd   : > { %1737 = dma.vmem_to_hbm [thread:$0]  (%p1982_p5), %s2246_s16, 128, %s2244_s19, %s1406_s25  }
 0xcbe PF: > { %p1743_p1 = scmp.ge.s32.totalorder %s1895_s24, 2  ;;  %s1431_s15 = sand.u32 1, %s1883_s21  }
 0xcbf   : > { %s1432_s17 = scalar_lea.sflag [#allocation3], %s1431_s15 }
 0xcc0   : > { %p1740_p2 = pnand %p1743_p1, %p1986_p6 }
 0xcc2   : > { %1878 = dma.done.wait (!%p1740_p2), %s1432_s17, 128  }
 0xcc3   : > { %1880 = vsyncadd (!%p1740_p2), %s1432_s17, 4294967168  ;;  %p16_p3 = scmp.ge.s32.totalorder %s1969_s27, 4   ;;  %s2296_s21 = smov %s1887_s22 }
 0xcc4   : > { %s2297_s22 = smov %s1891_s23  ;;  %s2298_s23 = smov %s1980_s30 }
 0xcc5   : > { %s2299_s24 = smov %s1969_s27  ;;  %18 = sbr.rel (!%p16_p3) target bundleno = 3 (0x3), region = 79 }
 0xccc   :  { %1437 = vsyncpa [#allocation3], 1 }
 0xccd   :  { %1439 = vsyncpa [#allocation3 + $0x1], 1 }

</bundles_post_ra>
